<compile_context>
chip_gen: v5e
topology: v5e:2x2
jax: 0.10.0
libtpu: 0.0.40
codegen_flags: <defaults>
</compile_context>

<pallas_src>
import numpy as np
import jax
import jax.numpy as jnp
from jax import lax
from jax.experimental import pallas as pl
from jax.experimental.pallas import tpu as pltpu

_RGB_W = (0.299, 0.587, 0.114)

# Fixed conv weights from JND.__init__ (used only by the pure-JAX reference).
_K_X = ((-1.0, 0.0, 1.0), (-2.0, 0.0, 2.0), (-1.0, 0.0, 1.0))
_K_Y = ((1.0, 2.0, 1.0), (0.0, 0.0, 0.0), (-1.0, -2.0, -1.0))
_K_LUM = ((1.0, 1.0, 1.0, 1.0, 1.0),
          (1.0, 2.0, 2.0, 2.0, 1.0),
          (1.0, 2.0, 0.0, 2.0, 1.0),
          (1.0, 2.0, 2.0, 2.0, 1.0),
          (1.0, 1.0, 1.0, 1.0, 1.0))


def _jnd_kernel(lum_ref, img_ref, imw_ref, out_ref):
    # lum_ref: (1, 1, th+4, W+4) zero-padded luma tile (halo'd), values in [0,255]
    # img_ref: (1, 3, th, W)     original imgs in [0,1]
    # imw_ref: (1, 3, th, W)     watermarked imgs in [0,1]
    # out_ref: (1, 3, th, W)
    th = out_ref.shape[2]
    W = out_ref.shape[3]

    lp = lum_ref[0, 0]                        # (th+4, W+4)

    # ---- shared vertical (sublane-axis) pass --------------------------------
    r0 = lp[0:th, :]
    r1 = lp[1:th + 1, :]
    r2 = lp[2:th + 2, :]
    r3 = lp[3:th + 3, :]
    r4 = lp[4:th + 4, :]

    v3 = r1 + r2 + r3                         # vertical box3
    v5 = v3 + r0 + r4                         # vertical box5
    s121 = v3 + r2                            # vertical [1,2,1]  (for gx)
    d101 = r1 - r3                            # vertical [1,0,-1] (for gy)

    # ---- horizontal (lane-axis) pass ----------------------------------------
    # luminance masking: K_LUM = box5x5 + box3x3 - 2*center, then /32
    h5 = (v5[:, 0:W] + v5[:, 1:W + 1] + v5[:, 2:W + 2]
          + v5[:, 3:W + 3] + v5[:, 4:W + 4])
    h3 = v3[:, 1:W + 1] + v3[:, 2:W + 2] + v3[:, 3:W + 3]
    center = r2[:, 2:W + 2]
    la = (h5 + h3 - 2.0 * center) * (1.0 / 32.0)
    la = jnp.where(la <= 127.0,
                   17.0 * (1.0 - jnp.sqrt(la * (1.0 / 127.0) + 1e-5)),
                   (3.0 / 128.0) * (la - 127.0) + 3.0)          # alpha = 1.0

    # contrast masking: Kx = [1,2,1]^T (x) [-1,0,1], Ky = [1,0,-1]^T (x) [1,2,1]
    gx = s121[:, 3:W + 3] - s121[:, 1:W + 1]
    gy = d101[:, 1:W + 1] + 2.0 * d101[:, 2:W + 2] + d101[:, 3:W + 3]
    s = gx * gx + gy * gy                     # = cm^2  (no sqrt needed)
    # cm**2.4 == s**1.2 ; guard reproduces torch's 0**2.4 == 0
    s12 = jnp.where(s > 0.0,
                    jnp.exp(1.2 * jnp.log(jnp.maximum(s, 1e-30))),
                    0.0)
    cm = (0.117 * 16.0) * s12 * pl.reciprocal(s + 676.0, approx=True)

    # ---- combine, clamp, normalize, apply ------------------------------------
    hm = jnp.maximum(la + cm - 0.3 * jnp.minimum(la, cm), 0.0) * (1.0 / 255.0)

    imgs = img_ref[0]                         # (3, th, W), unpadded
    out_ref[0] = (imgs + hm[None, :, :] * (imw_ref[0] - imgs)).astype(out_ref.dtype)


def _pick_tile_h(H, W, budget_bytes=20 << 20):
    """Largest tile_h (multiple of 8, dividing H) whose double-buffered
    per-step footprint stays under `budget_bytes` (safe for v7x 64 MiB VMEM)."""
    per_row = 4 * (10 * W + (W + 4))          # luma halo row + 3x3 image rows (f32)
    max_th = max(8, budget_bytes // (2 * per_row))
    if H <= max_th:
        return H                              # whole height fits: no tiling needed
    th = (min(max_th, H) // 8) * 8
    while th >= 8:
        if H % th == 0:
            return th
        th -= 8
    return H                                  # fallback (e.g. prime H)


def jnd_forward(imgs: jax.Array, imgs_w: jax.Array, *, tile_h=None) -> jax.Array:
    """imgs, imgs_w: (B, 3, H, W) float32 in [0,1]."""
    B, C, H, W = imgs.shape
    assert C == 3
    if tile_h is None:
        tile_h = _pick_tile_h(H, W)
    assert H % tile_h == 0
    assert tile_h == H or tile_h % 8 == 0, "tile_h must be a multiple of 8 when tiling"
    nh = H // tile_h
    Wp = W + 4

    # RGB -> luma in [0,255], zero-pad by 2, then materialize overlapping
    # (tile_h + 4)-row windows so the halo'd tile stays on the auto-pipelined
    # BlockSpec path (single-channel, so the duplicated halo bytes are tiny).
    luma = 255.0 * (_RGB_W[0] * imgs[:, 0] + _RGB_W[1] * imgs[:, 1]
                    + _RGB_W[2] * imgs[:, 2])                       # (B, H, W)
    luma_pad = jnp.pad(luma, ((0, 0), (2, 2), (2, 2)))              # (B, H+4, W+4)
    luma_tiles = jnp.stack(
        [luma_pad[:, i * tile_h: i * tile_h + tile_h + 4, :] for i in range(nh)],
        axis=1)                                                      # (B, nh, th+4, Wp)

    # TODO(synk): for very small W (<128) the output lane dim is under-utilized;
    # packing batch items along lanes would help but is not needed for image sizes.
    return pl.pallas_call(
        _jnd_kernel,
        out_shape=jax.ShapeDtypeStruct((B, C, H, W), imgs.dtype),
        grid_spec=pltpu.PrefetchScalarGridSpec(
            num_scalar_prefetch=0,
            grid=(B, nh),
            in_specs=[
                pl.BlockSpec((1, 1, tile_h + 4, Wp), lambda b, h: (b, h, 0, 0)),
                pl.BlockSpec((1, C, tile_h, W), lambda b, h: (b, 0, h, 0)),
                pl.BlockSpec((1, C, tile_h, W), lambda b, h: (b, 0, h, 0)),
            ],
            out_specs=pl.BlockSpec((1, C, tile_h, W), lambda b, h: (b, 0, h, 0)),
        ),
        compiler_params=pltpu.CompilerParams(
            dimension_semantics=("parallel", "parallel"),
            vmem_limit_bytes=64 * 1024 * 1024),
    )(luma_tiles, imgs, imgs_w)


def jnd_reference(imgs: jax.Array, imgs_w: jax.Array) -> jax.Array:
    """Pure-JAX reference replicating the PyTorch forward (NCHW)."""
    kx = jnp.array(_K_X, jnp.float32)[None, None]
    ky = jnp.array(_K_Y, jnp.float32)[None, None]
    klum = jnp.array(_K_LUM, jnp.float32)[None, None]
    dn = ("NCHW", "OIHW", "NCHW")

    def conv(x, k, p):
        return lax.conv_general_dilated(x, k, (1, 1), [(p, p), (p, p)],
                                        dimension_numbers=dn)

    x = 255.0 * (_RGB_W[0] * imgs[:, 0:1] + _RGB_W[1] * imgs[:, 1:2]
                 + _RGB_W[2] * imgs[:, 2:3])                    # (B,1,H,W)
    la = conv(x, klum, 2) / 32.0
    la = jnp.where(la <= 127.0,
                   17.0 * (1.0 - jnp.sqrt(la / 127.0 + 1e-5)),
                   (3.0 / 128.0) * (la - 127.0) + 3.0)
    gx = conv(x, kx, 1)
    gy = conv(x, ky, 1)
    cm = jnp.sqrt(gx ** 2 + gy ** 2)
    cm = 0.117 * (16.0 * cm ** 2.4 / (cm ** 2 + 26.0 ** 2))
    hm = jnp.maximum(la + cm - 0.3 * jnp.minimum(la, cm), 0.0) / 255.0
    hm = jnp.broadcast_to(hm, imgs.shape)          # out_channels=3 repeat
    return imgs + hm * (imgs_w - imgs)


if __name__ == "__main__":
    key = jax.random.PRNGKey(0)
    k1, k2 = jax.random.split(key)
    # Small but lane-dense test shape; tile_h=16 exercises the H-tiling path.
    B, C, H, W = 2, 3, 32, 128
    imgs = jax.random.uniform(k1, (B, C, H, W), dtype=jnp.float32)
    imgs_w = jax.random.uniform(k2, (B, C, H, W), dtype=jnp.float32)

    out = jnd_forward(imgs, imgs_w, tile_h=16)
    out = jax.block_until_ready(out)

    ref = jax.block_until_ready(jnd_reference(imgs, imgs_w))
    # slightly loosened tolerance accounts for the approx reciprocal (EUP vrcp)
    np.testing.assert_allclose(np.asarray(out), np.asarray(ref),
                               rtol=2e-3, atol=2e-3)
    print("KERNEL_OK")
</pallas_src>

<mosaic_0001>
module attributes {stable_mosaic.version = 11 : i64} {
  func.func @_jnd_kernel(%arg0: i32, %arg1: i32, %arg2: memref<1x1x20x132xf32, #tpu.memory_space<vmem>>, %arg3: memref<1x3x16x128xf32, #tpu.memory_space<vmem>>, %arg4: memref<1x3x16x128xf32, #tpu.memory_space<vmem>>, %arg5: memref<1x3x16x128xf32, #tpu.memory_space<vmem>>) attributes {dimension_semantics = [#tpu.dimension_semantics<parallel>, #tpu.dimension_semantics<parallel>], iteration_bounds = array<i64: 2, 2>, scalar_prefetch = 0 : i64, scratch_operands = 0 : i64, tpu.core_type = #tpu.core_type<tc>, window_params = [{transform_indices = @transform_0, window_bounds = array<i64: 1, 1, 20, 132>}, {transform_indices = @transform_1, window_bounds = array<i64: 1, 3, 16, 128>}, {transform_indices = @transform_2, window_bounds = array<i64: 1, 3, 16, 128>}, {transform_indices = @transform_3, window_bounds = array<i64: 1, 3, 16, 128>}]} {
    %c0 = arith.constant 0 : index
    %c0_0 = arith.constant 0 : index
    %c0_1 = arith.constant 0 : index
    %c0_2 = arith.constant 0 : index
    %0 = vector.load %arg2[%c0, %c0_0, %c0_1, %c0_2] : memref<1x1x20x132xf32, #tpu.memory_space<vmem>>, vector<1x1x20x132xf32>
    %1 = vector.shape_cast %0 : vector<1x1x20x132xf32> to vector<20x132xf32>
    %2 = vector.extract_strided_slice %1 {offsets = [0, 0], sizes = [16, 132], strides = [1, 1]} : vector<20x132xf32> to vector<16x132xf32>
    %3 = vector.extract_strided_slice %1 {offsets = [1, 0], sizes = [16, 132], strides = [1, 1]} : vector<20x132xf32> to vector<16x132xf32>
    %4 = vector.extract_strided_slice %1 {offsets = [2, 0], sizes = [16, 132], strides = [1, 1]} : vector<20x132xf32> to vector<16x132xf32>
    %5 = vector.extract_strided_slice %1 {offsets = [3, 0], sizes = [16, 132], strides = [1, 1]} : vector<20x132xf32> to vector<16x132xf32>
    %6 = vector.extract_strided_slice %1 {offsets = [4, 0], sizes = [16, 132], strides = [1, 1]} : vector<20x132xf32> to vector<16x132xf32>
    %7 = arith.addf %3, %4 : vector<16x132xf32>
    %8 = arith.addf %7, %5 : vector<16x132xf32>
    %9 = arith.addf %8, %2 : vector<16x132xf32>
    %10 = arith.addf %9, %6 : vector<16x132xf32>
    %11 = arith.addf %8, %4 : vector<16x132xf32>
    %12 = arith.subf %3, %5 : vector<16x132xf32>
    %13 = vector.extract_strided_slice %10 {offsets = [0, 0], sizes = [16, 128], strides = [1, 1]} : vector<16x132xf32> to vector<16x128xf32>
    %14 = vector.extract_strided_slice %10 {offsets = [0, 1], sizes = [16, 128], strides = [1, 1]} : vector<16x132xf32> to vector<16x128xf32>
    %15 = arith.addf %13, %14 : vector<16x128xf32>
    %16 = vector.extract_strided_slice %10 {offsets = [0, 2], sizes = [16, 128], strides = [1, 1]} : vector<16x132xf32> to vector<16x128xf32>
    %17 = arith.addf %15, %16 : vector<16x128xf32>
    %18 = vector.extract_strided_slice %10 {offsets = [0, 3], sizes = [16, 128], strides = [1, 1]} : vector<16x132xf32> to vector<16x128xf32>
    %19 = arith.addf %17, %18 : vector<16x128xf32>
    %20 = vector.extract_strided_slice %10 {offsets = [0, 4], sizes = [16, 128], strides = [1, 1]} : vector<16x132xf32> to vector<16x128xf32>
    %21 = arith.addf %19, %20 : vector<16x128xf32>
    %22 = vector.extract_strided_slice %8 {offsets = [0, 1], sizes = [16, 128], strides = [1, 1]} : vector<16x132xf32> to vector<16x128xf32>
    %23 = vector.extract_strided_slice %8 {offsets = [0, 2], sizes = [16, 128], strides = [1, 1]} : vector<16x132xf32> to vector<16x128xf32>
    %24 = arith.addf %22, %23 : vector<16x128xf32>
    %25 = vector.extract_strided_slice %8 {offsets = [0, 3], sizes = [16, 128], strides = [1, 1]} : vector<16x132xf32> to vector<16x128xf32>
    %26 = arith.addf %24, %25 : vector<16x128xf32>
    %27 = vector.extract_strided_slice %4 {offsets = [0, 2], sizes = [16, 128], strides = [1, 1]} : vector<16x132xf32> to vector<16x128xf32>
    %28 = arith.addf %21, %26 : vector<16x128xf32>
    %cst = arith.constant 2.000000e+00 : f32
    %29 = vector.broadcast %cst : f32 to vector<16x128xf32>
    %30 = arith.mulf %29, %27 : vector<16x128xf32>
    %31 = arith.subf %28, %30 : vector<16x128xf32>
    %cst_3 = arith.constant 3.125000e-02 : f32
    %32 = vector.broadcast %cst_3 : f32 to vector<16x128xf32>
    %33 = arith.mulf %31, %32 : vector<16x128xf32>
    %cst_4 = arith.constant 1.270000e+02 : f32
    %34 = vector.broadcast %cst_4 : f32 to vector<16x128xf32>
    %35 = arith.cmpf ole, %33, %34 : vector<16x128xf32>
    %cst_5 = arith.constant 0.00787401571 : f32
    %36 = vector.broadcast %cst_5 : f32 to vector<16x128xf32>
    %37 = arith.mulf %33, %36 : vector<16x128xf32>
    %cst_6 = arith.constant 9.99999974E-6 : f32
    %38 = vector.broadcast %cst_6 : f32 to vector<16x128xf32>
    %39 = arith.addf %37, %38 : vector<16x128xf32>
    %40 = math.sqrt %39 : vector<16x128xf32>
    %cst_7 = arith.constant 1.000000e+00 : f32
    %41 = vector.broadcast %cst_7 : f32 to vector<16x128xf32>
    %42 = arith.subf %41, %40 : vector<16x128xf32>
    %cst_8 = arith.constant 1.700000e+01 : f32
    %43 = vector.broadcast %cst_8 : f32 to vector<16x128xf32>
    %44 = arith.mulf %43, %42 : vector<16x128xf32>
    %cst_9 = arith.constant 1.270000e+02 : f32
    %45 = vector.broadcast %cst_9 : f32 to vector<16x128xf32>
    %46 = arith.subf %33, %45 : vector<16x128xf32>
    %cst_10 = arith.constant 2.343750e-02 : f32
    %47 = vector.broadcast %cst_10 : f32 to vector<16x128xf32>
    %48 = arith.mulf %47, %46 : vector<16x128xf32>
    %cst_11 = arith.constant 3.000000e+00 : f32
    %49 = vector.broadcast %cst_11 : f32 to vector<16x128xf32>
    %50 = arith.addf %48, %49 : vector<16x128xf32>
    %51 = arith.select %35, %44, %50 : vector<16x128xi1>, vector<16x128xf32>
    %52 = vector.extract_strided_slice %11 {offsets = [0, 3], sizes = [16, 128], strides = [1, 1]} : vector<16x132xf32> to vector<16x128xf32>
    %53 = vector.extract_strided_slice %11 {offsets = [0, 1], sizes = [16, 128], strides = [1, 1]} : vector<16x132xf32> to vector<16x128xf32>
    %54 = arith.subf %52, %53 : vector<16x128xf32>
    %55 = vector.extract_strided_slice %12 {offsets = [0, 1], sizes = [16, 128], strides = [1, 1]} : vector<16x132xf32> to vector<16x128xf32>
    %56 = vector.extract_strided_slice %12 {offsets = [0, 2], sizes = [16, 128], strides = [1, 1]} : vector<16x132xf32> to vector<16x128xf32>
    %cst_12 = arith.constant 2.000000e+00 : f32
    %57 = vector.broadcast %cst_12 : f32 to vector<16x128xf32>
    %58 = arith.mulf %57, %56 : vector<16x128xf32>
    %59 = arith.addf %55, %58 : vector<16x128xf32>
    %60 = vector.extract_strided_slice %12 {offsets = [0, 3], sizes = [16, 128], strides = [1, 1]} : vector<16x132xf32> to vector<16x128xf32>
    %61 = arith.addf %59, %60 : vector<16x128xf32>
    %62 = arith.mulf %54, %54 : vector<16x128xf32>
    %63 = arith.mulf %61, %61 : vector<16x128xf32>
    %64 = arith.addf %62, %63 : vector<16x128xf32>
    %cst_13 = arith.constant 0.000000e+00 : f32
    %65 = vector.broadcast %cst_13 : f32 to vector<16x128xf32>
    %66 = arith.cmpf ogt, %64, %65 : vector<16x128xf32>
    %cst_14 = arith.constant 1.000000e-30 : f32
    %67 = vector.broadcast %cst_14 : f32 to vector<16x128xf32>
    %68 = arith.maximumf %64, %67 : vector<16x128xf32>
    %69 = math.log %68 : vector<16x128xf32>
    %cst_15 = arith.constant 1.200000e+00 : f32
    %70 = vector.broadcast %cst_15 : f32 to vector<16x128xf32>
    %71 = arith.mulf %70, %69 : vector<16x128xf32>
    %72 = math.exp %71 : vector<16x128xf32>
    %cst_16 = arith.constant 0.000000e+00 : f32
    %73 = vector.broadcast %cst_16 : f32 to vector<16x128xf32>
    %74 = arith.select %66, %72, %73 : vector<16x128xi1>, vector<16x128xf32>
    %cst_17 = arith.constant 1.872000e+00 : f32
    %75 = vector.broadcast %cst_17 : f32 to vector<16x128xf32>
    %76 = arith.mulf %75, %74 : vector<16x128xf32>
    %cst_18 = arith.constant 6.760000e+02 : f32
    %77 = vector.broadcast %cst_18 : f32 to vector<16x128xf32>
    %78 = arith.addf %64, %77 : vector<16x128xf32>
    %79 = tpu.reciprocal %78 {approx = true} : vector<16x128xf32> -> vector<16x128xf32>
    %80 = arith.mulf %76, %79 : vector<16x128xf32>
    %81 = arith.addf %51, %80 : vector<16x128xf32>
    %82 = arith.minimumf %51, %80 : vector<16x128xf32>
    %cst_19 = arith.constant 3.000000e-01 : f32
    %83 = vector.broadcast %cst_19 : f32 to vector<16x128xf32>
    %84 = arith.mulf %83, %82 : vector<16x128xf32>
    %85 = arith.subf %81, %84 : vector<16x128xf32>
    %cst_20 = arith.constant 0.000000e+00 : f32
    %86 = vector.broadcast %cst_20 : f32 to vector<16x128xf32>
    %87 = arith.maximumf %85, %86 : vector<16x128xf32>
    %cst_21 = arith.constant 0.00392156886 : f32
    %88 = vector.broadcast %cst_21 : f32 to vector<16x128xf32>
    %89 = arith.mulf %87, %88 : vector<16x128xf32>
    %c0_22 = arith.constant 0 : index
    %c0_23 = arith.constant 0 : index
    %c0_24 = arith.constant 0 : index
    %c0_25 = arith.constant 0 : index
    %90 = vector.load %arg3[%c0_22, %c0_23, %c0_24, %c0_25] : memref<1x3x16x128xf32, #tpu.memory_space<vmem>>, vector<1x3x16x128xf32>
    %91 = vector.shape_cast %90 : vector<1x3x16x128xf32> to vector<3x16x128xf32>
    %92 = vector.shape_cast %89 : vector<16x128xf32> to vector<1x16x128xf32>
    %c0_26 = arith.constant 0 : index
    %c0_27 = arith.constant 0 : index
    %c0_28 = arith.constant 0 : index
    %c0_29 = arith.constant 0 : index
    %93 = vector.load %arg4[%c0_26, %c0_27, %c0_28, %c0_29] : memref<1x3x16x128xf32, #tpu.memory_space<vmem>>, vector<1x3x16x128xf32>
    %94 = vector.shape_cast %93 : vector<1x3x16x128xf32> to vector<3x16x128xf32>
    %95 = arith.subf %94, %91 : vector<3x16x128xf32>
    %96 = vector.broadcast %92 : vector<1x16x128xf32> to vector<3x16x128xf32>
    %97 = arith.mulf %96, %95 : vector<3x16x128xf32>
    %98 = arith.addf %91, %97 : vector<3x16x128xf32>
    %c0_30 = arith.constant 0 : index
    %c0_31 = arith.constant 0 : index
    %c0_32 = arith.constant 0 : index
    %c0_33 = arith.constant 0 : index
    %99 = vector.load %arg5[%c0_30, %c0_31, %c0_32, %c0_33] : memref<1x3x16x128xf32, #tpu.memory_space<vmem>>, vector<1x3x16x128xf32>
    %100 = vector.shape_cast %99 : vector<1x3x16x128xf32> to vector<3x16x128xf32>
    %101 = vector.shape_cast %98 : vector<3x16x128xf32> to vector<1x3x16x128xf32>
    tpu.vector_store %arg5[%c0_30, %c0_31, %c0_32, %c0_33], %101 {strides = array<i32>} : memref<1x3x16x128xf32, #tpu.memory_space<vmem>>, vector<1x3x16x128xf32>,
    return
  }
  func.func @transform_0(%arg0: i32, %arg1: i32) -> (i32, i32, i32, i32) {
    %c0_i32 = arith.constant 0 : i32
    %c0_i32_0 = arith.constant 0 : i32
    %c0_i32_1 = arith.constant 0 : i32
    return %arg0, %arg1, %c0_i32, %c0_i32_0 : i32, i32, i32, i32
  }
  func.func @transform_1(%arg0: i32, %arg1: i32) -> (i32, i32, i32, i32) {
    %c0_i32 = arith.constant 0 : i32
    %c0_i32_0 = arith.constant 0 : i32
    %c0_i32_1 = arith.constant 0 : i32
    return %arg0, %c0_i32, %arg1, %c0_i32_0 : i32, i32, i32, i32
  }
  func.func @transform_2(%arg0: i32, %arg1: i32) -> (i32, i32, i32, i32) {
    %c0_i32 = arith.constant 0 : i32
    %c0_i32_0 = arith.constant 0 : i32
    %c0_i32_1 = arith.constant 0 : i32
    return %arg0, %c0_i32, %arg1, %c0_i32_0 : i32, i32, i32, i32
  }
  func.func @transform_3(%arg0: i32, %arg1: i32) -> (i32, i32, i32, i32) {
    %c0_i32 = arith.constant 0 : i32
    %c0_i32_0 = arith.constant 0 : i32
    %c0_i32_1 = arith.constant 0 : i32
    return %arg0, %c0_i32, %arg1, %c0_i32_0 : i32, i32, i32, i32
  }
}

</mosaic_0001>

<bundles_post_ra>
// kernel: tpu_custom_call.1
= control target key start
LH: loop header
LB: loop body
LE: loop exit
PB: predicated region body
PF: predicated region fallthrough
CT: control target
= control target key end

     0   :  { %s2212_s0 = inlined_call_operand.vmem [shape: f32[2,2,20,132], index: 0, kind: input, shape index: {}]   ;;  %s2213_s1 = inlined_call_operand.vmem [shape: f32[2,3,32,128], index: 1, kind: input, shape index: {}]   ;;  %s2214_s2 = inlined_call_operand.hbm [shape: f32[2,3,32,128], index: 2, kind: input, shape index: {}]   ;;  %s2215_s3 = inlined_call_operand.hbm [shape: f32[2,3,32,128], index: 3, kind: output, shape index: {}]  }
   0x1   :  { %2220 = sst [smem:[#allocation18_spill]] %s2213_s1 }
   0x2   :  { %8 = vsyncpa [#allocation4], 0 }
   0x3   :  { %10 = vsyncpa [#allocation4 + $0x1], 0 }
   0x4   :  { %11 = vsyncpa [#allocation5], 0 }
   0x5   :  { %13 = vsyncpa [#allocation5 + $0x1], 0  ;;  %s1567_s12 = smov 0   ;;  %s1569_s13 = smov 0  }
   0x6   :  { %s1571_s14 = smov 0   ;;  %s1573_s15 = smov 0  }
   0x7   :  { %s1575_s16 = smov 0   ;;  %s1577_s17 = smov 0  }
   0x8   :  { %s1579_s18 = smov 0   ;;  %s1581_s19 = smov 0  }
   0x9 LB: > { %2221 = sst [smem:[#allocation14_spill]] %s1519_s17  ;;  %s1284_s20 = sadd.s32 4294967295, %s1527_s19   ;;  %s1527_s19 = sphi %s1581_s19, %s19_s19   ;;  %s1523_s18 = sphi %s1579_s18, %s2233_s18   ;;  %s1519_s17 = sphi %s1577_s17, %s2232_s17   ;;  %s1515_s16 = sphi %s1575_s16, %s2231_s16   ;;  %s1511_s15 = sphi %s1573_s15, %s2230_s15   ;;  %s1507_s14 = sphi %s1571_s14, %s2236_s14   ;;  %s1503_s13 = sphi %s1569_s13, %s2235_s13   ;;  %s1499_s12 = sphi %s1567_s12, %s2234_s12  }
   0xa   : > { %2222 = sst [smem:[#allocation15_spill]] %s1523_s18  ;;  %s1285_s21 = sadd.s32 4294967294, %s1527_s19  }
   0xb   : > { %s28_s22 = sadd.s32 1, %s1519_s17  ;;  %s31_s23 = sadd.s32 1, %s1523_s18 }
   0xc   : > { %p29_p0 = scmp.ge.s32.totalorder %s28_s22, 2  ;;  %p75_p1 = scmp.ne.s32.totalorder %s1507_s14, %s1503_s13 }
   0xd   : > { %p76_p2 = scmp.eq.s32.totalorder %s1527_s19, 0  ;;  %p109_p5 = scmp.ne.s32.totalorder %s1503_s13, %s1499_s12 }
   0xe   : > { %s2238_s22 = smov (%p29_p0, %s28_s22), 0  ;;  %s2240_s23 = smov (!%p29_p0, %s31_s23), %s1523_s18 }
   0xf   : > { %2223 = sst [smem:[#allocation16_spill]] %s2238_s22  ;;  %s64_s24 = ssub.s32 %s1519_s17, %s2238_s22 }
  0x10   : > { %p1619_p3 = por %p76_p2, %p75_p1  ;;  %p33_p4 = scmp.ge.s32.totalorder %s2240_s23, 2 }
  0x11   : > { %p110_p6 = scmp.eq.s32.totalorder %s1284_s20, 0  ;;  %p135_p7 = scmp.eq.s32.totalorder %s1284_s20, 3 }
  0x12   : > { %s2242_s23 = smov (%p33_p4, %s2240_s23), 0  ;;  %p141_p10 = scmp.eq.s32.totalorder %s1285_s21, 3 }
  0x13   : > { %2225 = sst [smem:[#allocation17_spill]] %s2242_s23  ;;  %p1627_p8 = por %p110_p6, %p109_p5 }
  0x14   : > { %p1631_p9 = por %p135_p7, %p75_p1  ;;  %s63_s28 = ssub.s32 %s1523_s18, %s2242_s23 }
  0x15   : > { %s65_s29 = sor.u32 %s64_s24, %s63_s28  ;;  %s68_s30 = sadd.s32 1, %s1507_s14 }
  0x16   : > { %p66_p11 = scmp.eq.s32.totalorder %s65_s29, 0  ;;  %p1638_p12 = por %p141_p10, %p109_p5 }
  0x17   : > { %p1287_p13 = scmp.ge.s32.totalorder %s1527_s19, 4 }
  0x18   : > { %s1643_s5 = scalar_select %p66_p11, %s1507_s14, %s68_s30  }
  0x19   : > { %157 = sbr.rel (%p1287_p13) target bundleno = 63 (0x3f), region = 16 }
  0x1e   : > { %172 = sbr.rel (!%p1619_p3) target bundleno = 46 (0x2e), region = 24  ;;  %s174_s6 = sand.u32 (%p1619_p3), 1, %s1507_s14  }
  0x1f   : > { %s1303_s7 = smul.u32 (%p1619_p3), 48, %s174_s6  ;;  %s1288_s8 = sshll.u32 (%p1619_p3), %s1519_s17, 1 }
  0x20   : > { %s1304_s9 = smul.u32 (%p1619_p3), 12, %s1523_s18  ;;  %s2229_s1 = sld [smem:[#allocation18_spill]] (%p1619_p3) }
  0x21   : > { %s176_s28 = scalar_lea.vmem (%p1619_p3), [#allocation2], %s1303_s7 }
  0x22   : > { %s179_s10 = sadd.s32 (%p1619_p3), %s1304_s9, %s1288_s8 }
  0x23   : > { %s1289_s11 = sshll.u32 %s179_s10, 3 }
  0x26   : > { %s181_s24 = scalar_lea.vmem %s2229_s1, %s1289_s11 }
  0x27   : > { %v220_v0 = vld [vmem:[%s181_s24] sm:$0xff]  ;;  %v222_v1 = vld [vmem:[%s181_s24 + $0x8] sm:$0xff] }
  0x28   : > { %v224_v2 = vld [vmem:[%s181_s24 + $0x20] sm:$0xff]  ;;  %221 = vst [vmem:[%s176_s28] sm:$0xff] %v220_v0  ;;  %v226_v3 = vld [vmem:[%s181_s24 + $0x28] sm:$0xff] }
  0x29   : > { %223 = vst [vmem:[%s176_s28 + $0x8] sm:$0xff] %v222_v1  ;;  %v228_v4 = vld [vmem:[%s181_s24 + $0x40] sm:$0xff]  ;;  %v230_v5 = vld [vmem:[%s181_s24 + $0x48] sm:$0xff] }
  0x2a   : > { %225 = vst [vmem:[%s176_s28 + $0x10] sm:$0xff] %v224_v2 }
  0x2b   : > { %227 = vst [vmem:[%s176_s28 + $0x18] sm:$0xff] %v226_v3 }
  0x2c   : > { %229 = vst [vmem:[%s176_s28 + $0x20] sm:$0xff] %v228_v4 }
  0x2d   : > { %231 = vst [vmem:[%s176_s28 + $0x28] sm:$0xff] %v230_v5 }
  0x2e PF: > { %s238_s29 = sand.u32 1, %s1507_s14   ;;  %s1290_s6 = sshll.u32 %s1519_s17, 1 }
  0x2f   : > { %s1305_s30 = smul.u32 48, %s238_s29  ;;  %s1529_s8 = smov 512  }
  0x30   : > { %s1306_s7 = smul.u32 12, %s1523_s18  ;;  %1312 = sst [smem:[#allocation8]] (%p1619_p3), %s1529_s8 }
  0x31   : > { %s1311_s24 = scalar_select %p1619_p3, [#allocation0], [#allocation11] }
  0x32   : > { %s247_s9 = sadd.s32 %s1306_s7, %s1290_s6  ;;  %s242_s28 = scalar_lea.vmem [#allocation3], %s1305_s30 }
  0x33   : > { %s1291_s10 = sshll.u32 %s247_s9, 3  ;;  %s264_s1 = sshll.u32 %s242_s28, 4  ;;  %s265_s1 = int_to_ptr.vmem [resolvable:$true] %s264_s1 }
  0x34   : > { %s249_s21 = scalar_lea.hbm %s2214_s2, %s1291_s10  ;;  %s1530_s23 = smov 256  }
  0x35   : > { %1313 = sst [smem:[#allocation8 + $0x1]] (%p1619_p3), %s1530_s23  ;;  %s262_s18 = sshll.u32 %s249_s21, 4  ;;  %s263_s18 = int_to_ptr.hbm [resolvable:$true] %s262_s18 }
  0x36   : > { %s254_s22 = sld [smem:[%s1311_s24]]   ;;  %s1531_s17 = smov 2  }
  0x37   : > { %1314 = sst [smem:[#allocation8 + $0x2]] (%p1619_p3), %s1531_s17  ;;  %s1532_s6 = smov 128  }
  0x38   : > { %1315 = sst [smem:[#allocation8 + $0x3]] (%p1619_p3), %s1532_s6  ;;  %s1533_s7 = smov 8  }
  0x39   : > { %1316 = sst [smem:[#allocation8 + $0x4]] (%p1619_p3), %s1532_s6  ;;  %s239_s9 = scalar_lea.sflag [#allocation4], %s238_s29 }
  0x3a   : > { %1317 = sst [smem:[#allocation8 + $0x5]] (%p1619_p3), %s1533_s7  ;;  %s1534_s23 = smov [#allocation7]  }
  0x3c   : > { %s1292_s30 = sshll.u32 %s254_s22, 26 }
  0x3d   : > { %s1293_s8 = sadd.s32 134217728, %s1292_s30 }
  0x3e   : > { %1318 = dma.general (%p1619_p3), %s263_s18, 768, %s265_s1, %s239_s9, %s1534_s23, [#allocation8], %s1293_s8, 0  }
  0x3f PF: > { %p1294_p0 = scmp.ge.s32.totalorder %s1527_s19, 1  ;;  %p285_p1 = scmp.lt.s32.totalorder %s1527_s19, 5 }
  0x41   : > { %p286_p2 = pnand %p1294_p0, %p285_p1 }
  0x42   : > { %s1679_s17 = sand.u32 (!%p286_p2), 1, %s1503_s13  }
  0x43   : > { %289 = sbr.rel (%p286_p2) target bundleno = 594 (0x252), region = 66  ;;  %s299_s1 = scalar_lea.sflag (!%p286_p2), [#allocation4], %s1679_s17 }
  0x44   : > { %s1682_s10 = smul.u32 (!%p286_p2), 48, %s1679_s17 }
  0x46   : > { %s1685_s22 = scalar_lea.vmem (!%p286_p2), [#allocation2], %s1682_s10  ;;  %s1689_s18 = scalar_lea.vmem (!%p286_p2), [#allocation3], %s1682_s10 }
  0x48   : > { %1490 = dma.done.wait (%p1627_p8), %s299_s1, 768  }
  0x49   : > { %1492 = vsyncadd (%p1627_p8), %s299_s1, 4294966528  ;;  %p339_p3 = scmp.lt.s32.totalorder %s1515_s16, 1  ;;  %p341_p4 = scmp.lt.s32.totalorder %s1511_s15, 1  ;;  %vm363_vm0 = vcmask 1046528   ;;  %vm386_vm1 = vcmask 1045504   ;;  %vm409_vm2 = vcmask 1040384  }
  0x4a   : > { %vm428_vm3 = vcmask 1044480   ;;  %s1535_s26 = smov 127   ;;  %s1536_s30 = smov 126   ;;  %vm481_vm4 = vcmask 1039360   ;;  %vm503_vm5 = vcmask 1031168   ;;  %vm525_vm6 = vcmask 1022976  }
  0x4b   : > { %s340_s25 = scalar_select %p339_p3, %s1515_s16, 1  ;;  %vm547_vm7 = vcmask 1014784   ;;  %vm771_vm8 = vcmask 15360  }
  0x4c   : > { %s342_s29 = scalar_select %p341_p4, %s1511_s15, 1 }
  0x4d   : > { %s1309_s11 = smul.u32 12, %s340_s25  ;;  %s1537_s8 = smov 125  }
  0x4e   : > { %s1308_s20 = smul.u32 6, %s342_s29  ;;  %s1538_s9 = smov 124  }
  0x4f   : > { %s1539_s23 = smov 2   ;;  %s1112_s1 = scalar_lea.sflag [#allocation5], %s1679_s17 }
  0x50   : > { %s345_s21 = sadd.s32 %s1309_s11, %s1308_s20 }
  0x51   : > { %s1295_s24 = sshll.u32 %s345_s21, 3 }
  0x52   : > { %s1702_s7 = scalar_lea.vmem %s2212_s0, %s1295_s24 }
  0x53   : > { %v1705_v6 = vld [vmem:[%s1702_s7] sm:$0xff]  ;;  %v1708_v7 = vld [vmem:[%s1702_s7 + $0x10] sm:$0xff]  ;;  %v1722_v13 = vld [vmem:[%s1702_s7 + $0x18] sm:$0xff] }
  0x54   : > { %v1711_v8 = vld [vmem:[%s1702_s7 + $0x20] sm:$0xf]  ;;  %v365_v9 = vrot.slane %v1708_v7, 1  ;;  %v388_v11 = vrot.slane %v1708_v7, 2  ;;  %v410_v14 = vrot.slane %v1705_v6, 7  ;;  %v412_v15 = vrot.slane %v1708_v7, 7 }
  0x55   : > { %v1715_v10 = vrot.slane %v1711_v8, 1  ;;  %v1719_v12 = vrot.slane %v1711_v8, 2  ;;  %v430_v16 = vrot.slane %v1708_v7, 3  ;;  %v435_v17 = vrot.slane %v1711_v8, 3  ;;  %v1729_v18 = vld [vmem:[%s1702_s7 + $0x28] sm:$0xf] }
  0x56   : > { %v364_v21 = vrot.slane %v1705_v6, 1  ;;  %v387_v22 = vrot.slane %v1705_v6, 2  ;;  %v413_v24 = vsel %vm409_vm2, %v410_v14, %v412_v15  ;;  %v429_v26 = vrot.slane %v1705_v6, 3  ;;  %v1763_v34 = vld [vmem:[%s1702_s7 + $0x8] sm:$0xff] }
  0x57   : > { %v1733_v19 = vsel %vm363_vm0, %v365_v9, %v1715_v10  ;;  %v1737_v20 = vsel %vm386_vm1, %v388_v11, %v1719_v12  ;;  %v436_v25 = vsel %vm428_vm3, %v430_v16, %v435_v17  ;;  %v368_v29 = vrot.slane %v1722_v13, 1 }
  0x58   : > { %v382_v23 = vadd.f32 %v1733_v19, %v1708_v7  ;;  %v1747_v27 = vsel %vm363_vm0, %v364_v21, %v365_v9  ;;  %v1750_v28 = vsel %vm386_vm1, %v387_v22, %v388_v11  ;;  %v1754_v30 = vrot.slane %v1729_v18, 1 }
  0x59   : > { %v380_v32 = vadd.f32 %v1747_v27, %v1705_v6  ;;  %v431_v33 = vsel %vm428_vm3, %v429_v26, %v430_v16  ;;  %v391_v35 = vrot.slane %v1722_v13, 2  ;;  %v1771_v37 = vrot.slane %v1729_v18, 2 }
  0x5a   : > { %v1757_v31 = vadd.f32 %v1737_v20, %v382_v23  ;;  %v1768_v36 = vsel %vm363_vm0, %v368_v29, %v1754_v30  ;;  %v411_v38 = vrot.slane %v1763_v34, 7  ;;  %v414_v39 = vrot.slane %v1722_v13, 7 }
  0x5b   : > { %v1777_v41 = vadd.f32 %v1750_v28, %v380_v32  ;;  %v383_v42 = vadd.f32 %v1768_v36, %v1722_v13  ;;  %v433_v43 = vrot.slane %v1722_v13, 3  ;;  %v396_v44 = vsel %vm386_vm1, %v391_v35, %v1771_v37 }
  0x5c   : > { %v424_v40 = vadd.f32 %v413_v24, %v1757_v31  ;;  %v415_v45 = vsel %vm409_vm2, %v411_v38, %v414_v39  ;;  %v437_v46 = vrot.slane %v1729_v18, 3  ;;  %v367_v47 = vrot.slane %v1763_v34, 1 }
  0x5d   : > { %v422_v49 = vadd.f32 %v410_v14, %v1777_v41  ;;  %v1790_v50 = vadd.f32 %v396_v44, %v383_v42  ;;  %v390_v51 = vrot.slane %v1763_v34, 2  ;;  %v432_v53 = vrot.slane %v1763_v34, 3 }
  0x5e   : > { %v1787_v48 = vadd.f32 %v436_v25, %v424_v40  ;;  %v1794_v52 = vsel %vm363_vm0, %v367_v47, %v368_v29  ;;  %v384_v54 = vadd.f32 %v1715_v10, %v1711_v8  ;;  %v438_v59 = vsel %vm428_vm3, %v433_v43, %v437_v46 }
  0x5f   : > { %v1801_v55 = vadd.f32 %v431_v33, %v422_v49  ;;  %v425_v56 = vadd.f32 %v415_v45, %v1790_v50  ;;  %v381_v57 = vadd.f32 %v1794_v52, %v1763_v34  ;;  %v392_v58 = vsel %vm386_vm1, %v390_v51, %v391_v35 }
  0x60   : > { %473 = vrot.lane.b32.xlu1 %v1787_v48, %s1535_s26  ;;  %v1809_v60 = vadd.f32 %v1719_v12, %v384_v54  ;;  %v385_v61 = vadd.f32 %v1754_v30, %v1729_v18  ;;  %v434_v63 = vsel %vm428_vm3, %v432_v53, %v433_v43  ;;  %v1861_v14 = vsub.f32 %v1763_v34, %v392_v58 }
  0x61   : > { %469 = vrot.lane.b32.xlu0 %v1801_v55, %s1535_s26  ;;  %v1815_v62 = vadd.f32 %v392_v58, %v381_v57  ;;  %v1822_v2 = vadd.f32 %v438_v59, %v425_v56  ;;  %v1875_v21 = vsub.f32 %v1708_v7, %v1737_v20  ;;  %v1880_v22 = vsub.f32 %v1711_v8, %v1719_v12 }
  0x62   : > { %v426_v0 = vadd.f32 %v412_v15, %v1809_v60  ;;  %v1820_v1 = vadd.f32 %v1771_v37, %v385_v61  ;;  %v1867_v15 = vsub.f32 %v1705_v6, %v1750_v28  ;;  %v788_v16 = vmul.f32 2.0, %v1861_v14 }
  0x63   : > { %v423_v3 = vadd.f32 %v411_v38, %v1815_v62  ;;  %v1884_v23 = vsub.f32 %v1722_v13, %v396_v44  ;;  %v789_v24 = vmul.f32 2.0, %v1875_v21  ;;  %v791_v25 = vmul.f32 2.0, %v1880_v22 }
  0x64   : > { %v1825_v4 = vadd.f32 %v435_v17, %v426_v0  ;;  %v427_v9 = vadd.f32 %v414_v39, %v1820_v1  ;;  %v787_v17 = vmul.f32 2.0, %v1867_v15  ;;  %v1892_v20 = vsub.f32 %v1729_v18, %v1771_v37 }
  0x65   : > { %v446_v5 = vadd.f32 %v434_v63, %v423_v3  ;;  %v790_v26 = vmul.f32 2.0, %v1884_v23  ;;  %v1949_v3 = vadd.f32 %v1777_v41, %v1747_v27  ;;  %v1964_v27 = vadd.f32 %v1757_v31, %v1733_v19 }
  0x66   : > { %477 = vrot.lane.b32.xlu2 %v1825_v4, %s1535_s26  ;;  %v1833_v11 = vadd.f32 %v437_v46, %v427_v9  ;;  %v792_v12 = vmul.f32 2.0, %v1892_v20 }
  0x68   : > { %475 = vrot.lane.b32.xlu1 %v1822_v2, %s1535_s26 }
  0x69   : > { %471 = vrot.lane.b32.xlu0 %v446_v5, %s1535_s26 }
  0x6e   : > { %479 = vrot.lane.b32.xlu2 %v1833_v11, %s1535_s26 }
  0x70   : > { %493 = vrot.lane.b32.xlu1 %v446_v5, %s1536_s30 }
  0x71   : > { %491 = vrot.lane.b32.xlu0 %v1801_v55, %s1536_s30 }
  0x76   : > { %495 = vrot.lane.b32.xlu2 %v1787_v48, %s1536_s30 }
  0x78   : > { %499 = vrot.lane.b32.xlu1 %v1825_v4, %s1536_s30 }
  0x79   : > { %497 = vrot.lane.b32.xlu0 %v1822_v2, %s1536_s30 }
  0x7e   : > { %501 = vrot.lane.b32.xlu2 %v1833_v11, %s1536_s30 }
  0x80   : > { %515 = vrot.lane.b32.xlu1 %v446_v5, %s1537_s8 }
  0x81   : > { %513 = vrot.lane.b32.xlu0 %v1801_v55, %s1537_s8 }
  0x86   : > { %517 = vrot.lane.b32.xlu2 %v1787_v48, %s1537_s8 }
  0x88   : > { %521 = vrot.lane.b32.xlu1 %v1825_v4, %s1537_s8 }
  0x89   : > { %519 = vrot.lane.b32.xlu0 %v1822_v2, %s1537_s8 }
  0x8e   : > { %523 = vrot.lane.b32.xlu2 %v1833_v11, %s1537_s8 }
  0x90   : > { %537 = vrot.lane.b32.xlu1 %v446_v5, %s1538_s9 }
  0x91   : > { %535 = vrot.lane.b32.xlu0 %v1801_v55, %s1538_s9 }
  0x96   : > { %539 = vrot.lane.b32.xlu2 %v1787_v48, %s1538_s9 }
  0x98   : > { %801 = vrot.lane.b32.xlu1 %v788_v16, %s1535_s26 }
  0x99   : > { %799 = vrot.lane.b32.xlu0 %v787_v17, %s1535_s26  ;;  %v1960_v17 = vadd.f32 %v1809_v60, %v1715_v10 }
  0x9e   : > { %803 = vrot.lane.b32.xlu2 %v789_v24, %s1535_s26  ;;  %v1968_v24 = vadd.f32 %v1790_v50, %v1768_v36 }
  0xa0   : > { %807 = vrot.lane.b32.xlu1 %v791_v25, %s1535_s26 }
  0xa1   : > { %805 = vrot.lane.b32.xlu0 %v790_v26, %s1535_s26 }
  0xa6   : > { %809 = vrot.lane.b32.xlu2 %v792_v12, %s1535_s26 }
  0xa8   : > { %834 = vrot.lane.b32.xlu1 %v1861_v14, %s1536_s30 }
  0xa9   : > { %832 = vrot.lane.b32.xlu0 %v1867_v15, %s1536_s30 }
  0xae   : > { %836 = vrot.lane.b32.xlu2 %v1875_v21, %s1536_s30 }
  0xb0   : > { %840 = vrot.lane.b32.xlu1 %v1880_v22, %s1536_s30 }
  0xb1   : > { %838 = vrot.lane.b32.xlu0 %v1884_v23, %s1536_s30 }
  0xb6   : > { %842 = vrot.lane.b32.xlu2 %v1892_v20, %s1536_s30 }
  0xb8   : > { %565 = vrot.lane.b32.xlu1 %v1815_v62, %s1535_s26 }
  0xb9   : > { %563 = vrot.lane.b32.xlu0 %v1777_v41, %s1535_s26 }
  0xbe   : > { %567 = vrot.lane.b32.xlu2 %v1757_v31, %s1535_s26 }
  0xc0   : > { %571 = vrot.lane.b32.xlu1 %v1809_v60, %s1535_s26  ;;  %v478_v28 = vpop.permute.xlu2 %477 }
  0xc1   : > { %569 = vrot.lane.b32.xlu0 %v1790_v50, %s1535_s26 }
  0xc6   : > { %573 = vrot.lane.b32.xlu2 %v1820_v1, %s1535_s26 }
  0xc8   : > { %592 = vrot.lane.b32.xlu1 %v1815_v62, %s1536_s30  ;;  %v480_v29 = vpop.permute.xlu2 %479 }
  0xc9   : > { %590 = vrot.lane.b32.xlu0 %v1777_v41, %s1536_s30  ;;  %v484_v32 = vsel %vm481_vm4, %v478_v28, %v480_v29  ;;  %v1984_v29 = vadd.f32 %v1820_v1, %v1754_v30 }
  0xca   : > { %v490_v54 = vadd.f32 %v484_v32, %v1825_v4 }
  0xce   : > { %594 = vrot.lane.b32.xlu2 %v1757_v31, %s1536_s30 }
  0xd0   : > { %598 = vrot.lane.b32.xlu1 %v1809_v60, %s1536_s30  ;;  %v496_v33 = vpop.permute.xlu2 %495 }
  0xd1   : > { %596 = vrot.lane.b32.xlu0 %v1790_v50, %s1536_s30 }
  0xd2   : > { %v474_v35 = vpop.permute.xlu1 %473 }
  0xd3   : > { %v470_v37 = vpop.permute.xlu0 %469 }
  0xd6   : > { %600 = vrot.lane.b32.xlu2 %v1820_v1, %s1536_s30 }
  0xd8   : > { %v502_v38 = vpop.permute.xlu2 %501 }
  0xd9   : > { %759 = vrot.lane.b32.xlu0 %v1949_v3, %s1539_s23 }
  0xda   : > { %v476_v39 = vpop.permute.xlu1 %475 }
  0xdb   : > { %v483_v40 = vsel %vm481_vm4, %v474_v35, %v476_v39  ;;  %v472_v42 = vpop.permute.xlu0 %471 }
  0xdc   : > { %v482_v43 = vsel %vm481_vm4, %v470_v37, %v472_v42  ;;  %v489_v58 = vadd.f32 %v483_v40, %v1787_v48 }
  0xdd   : > { %v488_v46 = vadd.f32 %v482_v43, %v1801_v55  ;;  %v1945_v55 = vadd.f32 %v1815_v62, %v1794_v52 }
  0xde   : > { %763 = vrot.lane.b32.xlu2 %v1964_v27, %s1539_s23 }
  0xdf   : > { %761 = vrot.lane.b32.xlu1 %v1945_v55, %s1539_s23 }
  0xe0   : > { %v518_v44 = vpop.permute.xlu2 %517 }
  0xe1   : > { %765 = vrot.lane.b32.xlu0 %v1968_v24, %s1539_s23 }
  0xe2   : > { %v494_v45 = vpop.permute.xlu1 %493 }
  0xe3   : > { %v492_v47 = vpop.permute.xlu0 %491 }
  0xe4   : > { %v504_v49 = vsel %vm503_vm5, %v492_v47, %v494_v45 }
  0xe5   : > { %v510_v51 = vadd.f32 %v504_v49, %v488_v46 }
  0xe6   : > { %769 = vrot.lane.b32.xlu2 %v1984_v29, %s1539_s23 }
  0xe7   : > { %767 = vrot.lane.b32.xlu1 %v1960_v17, %s1539_s23 }
  0xe8   : > { %v524_v53 = vpop.permute.xlu2 %523 }
  0xea   : > { %v500_v56 = vpop.permute.xlu1 %499 }
  0xeb   : > { %v506_v57 = vsel %vm503_vm5, %v500_v56, %v502_v38  ;;  %v498_v61 = vpop.permute.xlu0 %497 }
  0xec   : > { %v512_v59 = vadd.f32 %v506_v57, %v490_v54  ;;  %v505_v63 = vsel %vm503_vm5, %v496_v33, %v498_v61 }
  0xed   : > { %v511_v0 = vadd.f32 %v505_v63, %v489_v58 }
  0xf0   : > { %v1955_v5 = vpop.permute.xlu2 %539 }
  0xf2   : > { %v516_v48 = vpop.permute.xlu1 %515 }
  0xf3   : > { %v514_v9 = vpop.permute.xlu0 %513 }
  0xf4   : > { %v526_v16 = vsel %vm525_vm6, %v514_v9, %v516_v48 }
  0xf5   : > { %v532_v52 = vadd.f32 %v526_v16, %v510_v51 }
  0xf8   : > { %v804_v12 = vpop.permute.xlu2 %803 }
  0xfa   : > { %v522_v25 = vpop.permute.xlu1 %521 }
  0xfb   : > { %v528_v10 = vsel %vm525_vm6, %v522_v25, %v524_v53  ;;  %v520_v19 = vpop.permute.xlu0 %519 }
  0xfc   : > { %v1977_v26 = vadd.f32 %v528_v10, %v512_v59  ;;  %v527_v28 = vsel %vm525_vm6, %v518_v44, %v520_v19 }
  0xfd   : > { %v1980_v36 = vadd.f32 %v527_v28, %v511_v0 }
 0x100   : > { %v810_v38 = vpop.permute.xlu2 %809 }
 0x102   : > { %v538_v32 = vpop.permute.xlu1 %537 }
 0x103   : > { %v536_v33 = vpop.permute.xlu0 %535 }
 0x104   : > { %v548_v35 = vsel %vm547_vm7, %v536_v33, %v538_v32 }
 0x105   : > { %v1989_v37 = vadd.f32 %v548_v35, %v532_v52 }
 0x108   : > { %v837_v42 = vpop.permute.xlu2 %836 }
 0x10a   : > { %v802_v39 = vpop.permute.xlu1 %801 }
 0x10b   : > { %v800_v40 = vpop.permute.xlu0 %799  ;;  %v821_v45 = vadd.f32 %v802_v39, %v1861_v14 }
 0x10c   : > { %v811_v30 = vsel %vm481_vm4, %v800_v40, %v802_v39 }
 0x10d   : > { %v820_v51 = vadd.f32 %v811_v30, %v1867_v15 }
 0x110   : > { %v843_v46 = vpop.permute.xlu2 %842 }
 0x112   : > { %v808_v43 = vpop.permute.xlu1 %807 }
 0x113   : > { %v806_v44 = vpop.permute.xlu0 %805  ;;  %v813_v58 = vsel %vm481_vm4, %v808_v43, %v810_v38 }
 0x114   : > { %v812_v61 = vsel %vm481_vm4, %v804_v12, %v806_v44  ;;  %v824_v14 = vadd.f32 %v813_v58, %v1880_v22  ;;  %v823_v15 = vadd.f32 %v806_v44, %v1884_v23  ;;  %v825_v22 = vadd.f32 %v810_v38, %v1892_v20 }
 0x115   : > { %v822_v9 = vadd.f32 %v812_v61, %v1875_v21 }
 0x116   : > { %v858_v33 = vadd.f32 %v843_v46, %v825_v22 }
 0x118   : > { %v568_v0 = vpop.permute.xlu2 %567  ;;  %v870_v39 = vmul.f32 %v858_v33, %v858_v33 }
 0x11a   : > { %v835_v47 = vpop.permute.xlu1 %834 }
 0x11b   : > { %v854_v49 = vadd.f32 %v835_v47, %v821_v45  ;;  %v833_v53 = vpop.permute.xlu0 %832 }
 0x11c   : > { %v844_v56 = vsel %vm503_vm5, %v833_v53, %v835_v47 }
 0x11d   : > { %v866_v54 = vmul.f32 %v854_v49, %v854_v49  ;;  %v853_v57 = vadd.f32 %v844_v56, %v820_v51  ;;  %v645_v56 = vmul.f32 2.0, %v1763_v34 }
 0x11f   : > { %879 = vrot.lane.b32.xlu1 %v866_v54, %s1539_s23  ;;  %v865_v59 = vmul.f32 %v853_v57, %v853_v57  ;;  %v647_v57 = vmul.f32 2.0, %v1722_v13 }
 0x120   : > { %v574_v35 = vpop.permute.xlu2 %573 }
 0x121   : > { %877 = vrot.lane.b32.xlu0 %v865_v59, %s1539_s23 }
 0x122   : > { %v841_v63 = vpop.permute.xlu1 %840 }
 0x123   : > { %v846_v48 = vsel %vm503_vm5, %v841_v63, %v843_v46  ;;  %v839_v52 = vpop.permute.xlu0 %838  ;;  %v646_v63 = vmul.f32 2.0, %v1708_v7  ;;  %v649_v7 = vmul.f32 2.0, %v1729_v18 }
 0x124   : > { %v857_v16 = vadd.f32 %v846_v48, %v824_v14  ;;  %v845_v25 = vsel %vm503_vm5, %v837_v42, %v839_v52  ;;  %v856_v10 = vadd.f32 %v839_v52, %v823_v15  ;;  %v589_v15 = vadd.f32 %v574_v35, %v1820_v1 }
 0x125   : > { %v855_v28 = vadd.f32 %v845_v25, %v822_v9  ;;  %v657_v34 = vrot.slane %v646_v63, 1  ;;  %v664_v1 = vrot.slane %v649_v7, 1 }
 0x126   : > { %v869_v19 = vmul.f32 %v857_v16, %v857_v16  ;;  %v868_v12 = vmul.f32 %v856_v10, %v856_v10  ;;  %v648_v16 = vmul.f32 2.0, %v1711_v8 }
 0x127   : > { %v867_v32 = vmul.f32 %v855_v28, %v855_v28 }
 0x128   : > { %885 = vrot.lane.b32.xlu1 %v869_v19, %s1539_s23  ;;  %v595_v40 = vpop.permute.xlu2 %594  ;;  %v662_v52 = vrot.slane %v648_v16, 1 }
 0x129   : > { %883 = vrot.lane.b32.xlu0 %v868_v12, %s1539_s23  ;;  %881 = vrot.lane.b32.xlu2 %v867_v32, %s1539_s23 }
 0x12a   : > { %v566_v23 = vpop.permute.xlu1 %565  ;;  %v663_v10 = vsel %vm363_vm0, %v657_v34, %v662_v52 }
 0x12b   : > { %v564_v21 = vpop.permute.xlu0 %563  ;;  %v585_v42 = vadd.f32 %v566_v23, %v1815_v62 }
 0x12c   : > { %v575_v43 = vsel %vm481_vm4, %v564_v21, %v566_v23 }
 0x12d   : > { %v584_v44 = vadd.f32 %v575_v43, %v1777_v41 }
 0x130   : > { %543 = vrot.lane.b32.xlu1 %v1825_v4, %s1538_s9  ;;  %v601_v41 = vpop.permute.xlu2 %600 }
 0x131   : > { %541 = vrot.lane.b32.xlu0 %v1822_v2, %s1538_s9  ;;  %887 = vrot.lane.b32.xlu2 %v870_v39, %s1539_s23  ;;  %v616_v9 = vadd.f32 %v601_v41, %v589_v15 }
 0x132   : > { %v572_v20 = vpop.permute.xlu1 %571 }
 0x133   : > { %v570_v38 = vpop.permute.xlu0 %569  ;;  %v577_v46 = vsel %vm481_vm4, %v572_v20, %v574_v35 }
 0x134   : > { %v576_v49 = vsel %vm481_vm4, %v568_v0, %v570_v38  ;;  %v588_v62 = vadd.f32 %v577_v46, %v1809_v60  ;;  %v587_v51 = vadd.f32 %v570_v38, %v1790_v50  ;;  %v644_v60 = vmul.f32 2.0, %v1705_v6 }
 0x135   : > { %v660_v50 = vrot.slane %v647_v57, 1 }
 0x136   : > { %v656_v13 = vrot.slane %v644_v60, 1 }
 0x137   : > { %v665_v25 = vsel %vm363_vm0, %v660_v50, %v664_v1 }
 0x138   : > { %v658_v6 = vsel %vm363_vm0, %v656_v13, %v657_v34  ;;  %v764_v18 = vpop.permute.xlu2 %763 }
 0x139   : > { %545 = vrot.lane.b32.xlu2 %v1833_v11, %s1538_s9  ;;  %v586_v11 = vadd.f32 %v576_v49, %v1757_v31  ;;  %v659_v31 = vrot.slane %v645_v56, 1  ;;  %v783_v19 = vsub.f32 %v1964_v27, %v764_v18 }
 0x13a   : > { %v593_v45 = vpop.permute.xlu1 %592 }
 0x13b   : > { %v612_v30 = vadd.f32 %v593_v45, %v585_v42  ;;  %v591_v4 = vpop.permute.xlu0 %590  ;;  %v661_v48 = vsel %vm363_vm0, %v659_v31, %v660_v50  ;;  %v861_v22 = vmul.f32 %v783_v19, %v783_v19 }
 0x13c   : > { %v602_v2 = vsel %vm503_vm5, %v591_v4, %v593_v45 }
 0x13d   : > { %625 = vrot.lane.b32.xlu1 %v612_v30, %s1535_s26  ;;  %v611_v47 = vadd.f32 %v602_v2, %v584_v44 }
 0x13f   : > { %623 = vrot.lane.b32.xlu0 %v611_v47, %s1535_s26 }
 0x140   : > { %v770_v8 = vpop.permute.xlu2 %769 }
 0x142   : > { %v599_v53 = vpop.permute.xlu1 %598 }
 0x143   : > { %v604_v54 = vsel %vm503_vm5, %v599_v53, %v601_v41  ;;  %v597_v59 = vpop.permute.xlu0 %596 }
 0x144   : > { %v615_v58 = vadd.f32 %v604_v54, %v588_v62  ;;  %v603_v61 = vsel %vm503_vm5, %v595_v40, %v597_v59  ;;  %v614_v14 = vadd.f32 %v597_v59, %v587_v51 }
 0x145   : > { %v613_v0 = vadd.f32 %v603_v61, %v586_v11 }
 0x146   : > { %631 = vrot.lane.b32.xlu1 %v615_v58, %s1535_s26 }
 0x147   : > { %629 = vrot.lane.b32.xlu0 %v614_v14, %s1535_s26  ;;  %627 = vrot.lane.b32.xlu2 %v613_v0, %s1535_s26 }
 0x14b   : > { %v760_v12 = vpop.permute.xlu0 %759 }
 0x14c   : > { %v781_v38 = vsub.f32 %v1949_v3, %v760_v12 }
 0x14e   : > { %668 = vrot.lane.b32.xlu1 %v661_v48, %s1536_s30  ;;  %v859_v44 = vmul.f32 %v781_v38, %v781_v38 }
 0x14f   : > { %666 = vrot.lane.b32.xlu0 %v658_v6, %s1536_s30  ;;  %633 = vrot.lane.b32.xlu2 %v616_v9, %s1535_s26 }
 0x151   : > { %v762_v28 = vpop.permute.xlu1 %761 }
 0x152   : > { %v772_v39 = vsel %vm771_vm8, %v760_v12, %v762_v28 }
 0x153   : > { %v766_v35 = vpop.permute.xlu0 %765  ;;  %v782_v42 = vsub.f32 %v1945_v55, %v772_v39 }
 0x154   : > { %v773_v49 = vsel %vm771_vm8, %v764_v18, %v766_v35 }
 0x155   : > { %v860_v46 = vmul.f32 %v782_v42, %v782_v42  ;;  %v784_v11 = vsub.f32 %v1968_v24, %v773_v49 }
 0x156   : > { %674 = vrot.lane.b32.xlu1 %v662_v52, %s1536_s30 }
 0x157   : > { %672 = vrot.lane.b32.xlu0 %v665_v25, %s1536_s30  ;;  %670 = vrot.lane.b32.xlu2 %v663_v10, %s1536_s30  ;;  %v862_v61 = vmul.f32 %v784_v11, %v784_v11 }
 0x159   : > { %v768_v21 = vpop.permute.xlu1 %767 }
 0x15a   : > { %v774_v45 = vsel %vm771_vm8, %v768_v21, %v770_v8  ;;  %v785_v47 = vsub.f32 %v1960_v17, %v768_v21 }
 0x15b   : > { %v786_v55 = vsub.f32 %v1984_v29, %v774_v45 }
 0x15c   : > { %v863_v54 = vmul.f32 %v785_v47, %v785_v47 }
 0x15d   : > { %v864_v17 = vmul.f32 %v786_v55, %v786_v55 }
 0x15f   : > { %676 = vrot.lane.b32.xlu2 %v664_v1, %s1536_s30 }
 0x183   : > { %v882_v32 = vpop.permute.xlu2 %881 }
 0x184   : > { %v900_v23 = vadd.f32 %v882_v32, %v861_v22 }
 0x186   : > { %v912_v33 = vmax.f32 %v900_v23, 1e-30  ;;  %v960_v4 = vadd.f32 676.0, %v900_v23  ;;  %vm906_vm9 = vcmp.gt.f32.partialorder %v900_v23, 0.0 }
 0x188   : > { %1415 = vlog2.f32 %v912_v33 }
 0x18b   : > { %v888_v56 = vpop.permute.xlu2 %887 }
 0x18e   : > { %v1416_v20 = vpop.eup %1415 }
 0x18f   : > { %v921_v40 = vmul.f32 0.6931472, %v1416_v20 }
 0x191   : > { %v880_v43 = vpop.permute.xlu1 %879  ;;  %v930_v27 = vmul.f32 1.2, %v921_v40 }
 0x193   : > { %v938_v30 = vmul.f32 1.442695, %v930_v27  ;;  %v878_v2 = vpop.permute.xlu0 %877 }
 0x194   : > { %v889_v62 = vsel %vm771_vm8, %v878_v2, %v880_v43  ;;  %v2057_v41 = vadd.f32 %v878_v2, %v859_v44 }
 0x195   : > { %1417 = vpow2.f32 %v938_v30  ;;  %v2060_v3 = vadd.f32 %v889_v62, %v860_v46 }
 0x196   : > { %v910_v51 = vmax.f32 %v2057_v41, 1e-30  ;;  %1419 = vrcp.f32 %v960_v4  ;;  %v958_v8 = vadd.f32 676.0, %v2057_v41  ;;  %vm904_vm10 = vcmp.gt.f32.partialorder %v2057_v41, 0.0 }
 0x197   : > { %v911_v53 = vmax.f32 %v2060_v3, 1e-30  ;;  %v959_v28 = vadd.f32 676.0, %v2060_v3  ;;  %vm905_vm11 = vcmp.gt.f32.partialorder %v2060_v3, 0.0 }
 0x198   : > { %1421 = vlog2.f32 %v910_v51 }
 0x199   : > { %1423 = vlog2.f32 %v911_v53 }
 0x19a   : > { %v886_v57 = vpop.permute.xlu1 %885 }
 0x19b   : > { %v891_v58 = vsel %vm771_vm8, %v886_v57, %v888_v56  ;;  %v2066_v59 = vadd.f32 %v886_v57, %v863_v54  ;;  %v1418_v29 = vpop.eup %1417  ;;  %v884_v60 = vpop.permute.xlu0 %883 }
 0x19c   : > { %v2068_v14 = vadd.f32 %v891_v58, %v864_v17  ;;  %v890_v63 = vsel %vm771_vm8, %v882_v32, %v884_v60  ;;  %v1420_v0 = vpop.eup %1419  ;;  %v948_v15 = vsel %vm906_vm9, %v1418_v29, 0.0 }
 0x19d   : > { %v914_v24 = vmax.f32 %v2066_v59, 1e-30  ;;  %v2073_v50 = vadd.f32 %v890_v63, %v862_v61  ;;  %v954_v34 = vmul.f32 1.872, %v948_v15  ;;  %v962_v35 = vadd.f32 676.0, %v2066_v59 }
 0x19e   : > { %v915_v31 = vmax.f32 %v2068_v14, 1e-30  ;;  %v1422_v13 = vpop.eup %1421  ;;  %v963_v38 = vadd.f32 676.0, %v2068_v14  ;;  %vm908_vm12 = vcmp.gt.f32.partialorder %v2066_v59, 0.0  ;;  %vm909_vm13 = vcmp.gt.f32.partialorder %v2068_v14, 0.0 }
 0x19f   : > { %1425 = vlog2.f32 %v914_v24  ;;  %v1424_v48 = vpop.eup %1423  ;;  %v917_v9 = vmul.f32 0.6931472, %v1422_v13  ;;  %v913_v6 = vmax.f32 %v2073_v50, 1e-30  ;;  %v972_v16 = vmul.f32 %v1420_v0, %v954_v34  ;;  %v546_v24 = vpop.permute.xlu2 %545 }
 0x1a0   : > { %1427 = vlog2.f32 %v915_v31  ;;  %v919_v7 = vmul.f32 0.6931472, %v1424_v48  ;;  %v961_v46 = vadd.f32 676.0, %v2073_v50  ;;  %vm907_vm14 = vcmp.gt.f32.partialorder %v2073_v50, 0.0 }
 0x1a1   : > { %v928_v1 = vmul.f32 1.2, %v917_v9  ;;  %1429 = vlog2.f32 %v913_v6  ;;  %986 = vrot.lane.b32.xlu2 %v972_v16, %s1537_s8 }
 0x1a2   : > { %v929_v52 = vmul.f32 1.2, %v919_v7  ;;  %v544_v14 = vpop.permute.xlu1 %543 }
 0x1a3   : > { %v934_v25 = vmul.f32 1.442695, %v928_v1  ;;  %v542_v63 = vpop.permute.xlu0 %541 }
 0x1a4   : > { %v936_v18 = vmul.f32 1.442695, %v929_v52  ;;  %v550_v52 = vsel %vm547_vm7, %v544_v14, %v546_v24 }
 0x1a5   : > { %v1426_v10 = vpop.eup %1425  ;;  %1431 = vpow2.f32 %v934_v25  ;;  %v549_v25 = vsel %vm547_vm7, %v1955_v5, %v542_v63 }
 0x1a6   : > { %v1428_v19 = vpop.eup %1427  ;;  %v925_v12 = vmul.f32 0.6931472, %v1426_v10  ;;  %1433 = vpow2.f32 %v936_v18 }
 0x1a7   : > { %v927_v22 = vmul.f32 0.6931472, %v1428_v19  ;;  %v1430_v23 = vpop.eup %1429  ;;  %1435 = vrcp.f32 %v958_v8  ;;  %v628_v31 = vpop.permute.xlu2 %627 }
 0x1a8   : > { %v932_v32 = vmul.f32 1.2, %v925_v12  ;;  %1437 = vrcp.f32 %v959_v28  ;;  %v923_v39 = vmul.f32 0.6931472, %v1430_v23  ;;  %v556_v12 = vadd.f32 %v550_v52, %v1977_v26 }
 0x1a9   : > { %v933_v33 = vmul.f32 1.2, %v927_v22 }
 0x1aa   : > { %v942_v21 = vmul.f32 1.442695, %v932_v32  ;;  %v931_v42 = vmul.f32 1.2, %v923_v39  ;;  %v555_v32 = vadd.f32 %v549_v25, %v1980_v36 }
 0x1ab   : > { %v944_v20 = vmul.f32 1.442695, %v933_v33  ;;  %v1432_v40 = vpop.eup %1431 }
 0x1ac   : > { %1439 = vpow2.f32 %v942_v21  ;;  %v1434_v43 = vpop.eup %1433  ;;  %v946_v27 = vsel %vm904_vm10, %v1432_v40, 0.0  ;;  %v940_v44 = vmul.f32 1.442695, %v931_v42 }
 0x1ad   : > { %1441 = vpow2.f32 %v944_v20  ;;  %v952_v45 = vmul.f32 1.872, %v946_v27  ;;  %v947_v30 = vsel %vm905_vm11, %v1434_v43, 0.0  ;;  %v1436_v4 = vpop.eup %1435 }
 0x1ae   : > { %1443 = vrcp.f32 %v962_v35  ;;  %v953_v2 = vmul.f32 1.872, %v947_v30  ;;  %v1438_v47 = vpop.eup %1437 }
 0x1af   : > { %1445 = vrcp.f32 %v963_v38  ;;  %v970_v49 = vmul.f32 %v1436_v4, %v952_v45  ;;  %v626_v0 = vpop.permute.xlu1 %625  ;;  %v634_v50 = vpop.permute.xlu2 %633 }
 0x1b0   : > { %1447 = vpow2.f32 %v940_v44  ;;  %v971_v62 = vmul.f32 %v1438_v47, %v953_v2 }
 0x1b1   : > { %982 = vrot.lane.b32.xlu0 %v970_v49, %s1537_s8  ;;  %1449 = vrcp.f32 %v961_v46  ;;  %v624_v15 = vpop.permute.xlu0 %623 }
 0x1b2   : > { %v1440_v41 = vpop.eup %1439  ;;  %984 = vrot.lane.b32.xlu1 %v971_v62, %s1537_s8  ;;  %v635_v7 = vsel %vm481_vm4, %v624_v15, %v626_v0 }
 0x1b3   : > { %v1442_v55 = vpop.eup %1441  ;;  %v950_v3 = vsel %vm908_vm12, %v1440_v41, 0.0  ;;  %v641_v1 = vadd.f32 %v635_v7, %v1989_v37 }
 0x1b4   : > { %v1444_v51 = vpop.eup %1443  ;;  %v951_v11 = vsel %vm909_vm13, %v1442_v55, 0.0  ;;  %v956_v53 = vmul.f32 1.872, %v950_v3 }
 0x1b5   : > { %v1446_v54 = vpop.eup %1445  ;;  %v957_v17 = vmul.f32 1.872, %v951_v11 }
 0x1b6   : > { %v1448_v56 = vpop.eup %1447  ;;  %v974_v58 = vmul.f32 %v1444_v51, %v956_v53 }
 0x1b7   : > { %v975_v57 = vmul.f32 %v1446_v54, %v957_v17  ;;  %v949_v59 = vsel %vm907_vm14, %v1448_v56, 0.0  ;;  %v1450_v61 = vpop.eup %1449  ;;  %v671_v9 = vpop.permute.xlu2 %670 }
 0x1b8   : > { %v955_v29 = vmul.f32 1.872, %v949_v59  ;;  %v632_v13 = vpop.permute.xlu1 %631 }
 0x1b9   : > { %992 = vrot.lane.b32.xlu2 %v975_v57, %s1537_s8  ;;  %v630_v34 = vpop.permute.xlu0 %629  ;;  %v637_v19 = vsel %vm481_vm4, %v632_v13, %v634_v50 }
 0x1ba   : > { %v973_v60 = vmul.f32 %v1450_v61, %v955_v29  ;;  %990 = vrot.lane.b32.xlu1 %v974_v58, %s1537_s8  ;;  %v636_v22 = vsel %vm481_vm4, %v628_v31, %v630_v34  ;;  %v643_v37 = vadd.f32 %v637_v19, %v556_v12 }
 0x1bb   : > { %v642_v5 = vadd.f32 %v636_v22, %v555_v32 }
 0x1bc   : > { %988 = vrot.lane.b32.xlu0 %v973_v60, %s1537_s8 }
 0x1bf   : > { %v677_v8 = vpop.permute.xlu2 %676 }
 0x1c0   : > { %v669_v48 = vpop.permute.xlu1 %668 }
 0x1c1   : > { %v667_v6 = vpop.permute.xlu0 %666 }
 0x1c2   : > { %v678_v16 = vsel %vm503_vm5, %v667_v6, %v669_v48 }
 0x1c3   : > { %v684_v10 = vsub.f32 %v641_v1, %v678_v16 }
 0x1c5   : > { %v2103_v33 = vmul.f32 0.03125, %v684_v10 }
 0x1c7   : > { %v693_v20 = vmul.f32 0.007874016, %v2103_v33  ;;  %v1296_v14 = vadd.f32 -127.0, %v2103_v33  ;;  %vm690_vm8 = vcmp.le.f32.partialorder %v2103_v33, 127.0  ;;  %v2119_v33 = vld [vmem:[%s1685_s22] sm:$0xff] }
 0x1c8   : > { %v675_v18 = vpop.permute.xlu1 %674 }
 0x1c9   : > { %v673_v28 = vpop.permute.xlu0 %672  ;;  %v680_v23 = vsel %vm503_vm5, %v675_v18, %v677_v8  ;;  %v696_v26 = vadd.f32 1e-05, %v693_v20  ;;  %v744_v31 = vmul.f32 0.0234375, %v1296_v14  ;;  %v2126_v20 = vld [vmem:[%s1685_s22 + $0x18] sm:$0xff] }
 0x1ca   : > { %v679_v21 = vsel %vm503_vm5, %v671_v9, %v673_v28  ;;  %v686_v35 = vsub.f32 %v643_v37, %v680_v23 }
 0x1cb   : > { %v685_v39 = vsub.f32 %v642_v5, %v679_v21  ;;  %1451 = vrsqrt.f32 %v696_v26  ;;  %vm706_vm15 = vcmp.eq.f32.partialorder %v696_v26, inf  ;;  %v709_v59 = vand.u32 2147483648, %v696_v26  ;;  %v1024_v21 = vld [vmem:[%s1689_s18] sm:$0xff]  ;;  %v2123_v5 = vld [vmem:[%s1685_s22 + $0x8] sm:$0xff] }
 0x1cc   : > { %v2107_v38 = vmul.f32 0.03125, %v686_v35  ;;  %vm708_vm1 = vcmp.eq.f32.partialorder %v696_v26, 0.0  ;;  %v747_v16 = vadd.f32 3.0, %v744_v31 }
 0x1cd   : > { %v2109_v40 = vmul.f32 0.03125, %v685_v39 }
 0x1ce   : > { %v695_v42 = vmul.f32 0.007874016, %v2107_v38  ;;  %v1298_v9 = vadd.f32 -127.0, %v2107_v38  ;;  %vm692_vm9 = vcmp.le.f32.partialorder %v2107_v38, 127.0 }
 0x1cf   : > { %v694_v36 = vmul.f32 0.007874016, %v2109_v40  ;;  %v1297_v6 = vadd.f32 -127.0, %v2109_v40  ;;  %vm691_vm10 = vcmp.le.f32.partialorder %v2109_v40, 127.0 }
 0x1d0   : > { %v698_v43 = vadd.f32 1e-05, %v695_v42  ;;  %v746_v19 = vmul.f32 0.0234375, %v1298_v9  ;;  %v1027_v42 = vld [vmem:[%s1689_s18 + $0x18] sm:$0xff] }
 0x1d1   : > { %v697_v27 = vadd.f32 1e-05, %v694_v36  ;;  %v1452_v44 = vpop.eup %1451  ;;  %v745_v28 = vmul.f32 0.0234375, %v1297_v6  ;;  %v1033_v38 = vsub.f32 %v1027_v42, %v2126_v20 }
 0x1d2   : > { %1453 = vrsqrt.f32 %v698_v43  ;;  %v700_v45 = vmul.f32 %v1452_v44, %v696_v26  ;;  %vm730_vm3 = vcmp.eq.f32.partialorder %v698_v43, inf  ;;  %v733_v15 = vand.u32 2147483648, %v698_v43 }
 0x1d3   : > { %1455 = vrsqrt.f32 %v697_v27  ;;  %vm718_vm4 = vcmp.eq.f32.partialorder %v697_v27, inf  ;;  %v721_v13 = vand.u32 2147483648, %v697_v27  ;;  %vm732_vm5 = vcmp.eq.f32.partialorder %v698_v43, 0.0 }
 0x1d4   : > { %v701_v46 = vmul.f32 %v1452_v44, %v700_v45  ;;  %vm720_vm7 = vcmp.eq.f32.partialorder %v697_v27, 0.0  ;;  %v749_v39 = vadd.f32 3.0, %v746_v19  ;;  %v748_v36 = vadd.f32 3.0, %v745_v28  ;;  %v2137_v45 = vld [vmem:[%s1685_s22 + $0x10] sm:$0xff] }
 0x1d6   : > { %v702_v49 = vmul.f32 0.5, %v701_v46 }
 0x1d8   : > { %v1454_v30 = vpop.eup %1453  ;;  %v703_v55 = vsub.f32 1.5, %v702_v49  ;;  %v1028_v49 = vld [vmem:[%s1689_s18 + $0x20] sm:$0xff] }
 0x1d9   : > { %v1456_v4 = vpop.eup %1455  ;;  %v724_v2 = vmul.f32 %v1454_v30, %v698_v43 }
 0x1da   : > { %v712_v47 = vmul.f32 %v1456_v4, %v697_v27  ;;  %v704_v11 = vmul.f32 %v1452_v44, %v703_v55 }
 0x1db   : > { %v725_v62 = vmul.f32 %v1454_v30, %v724_v2 }
 0x1dc   : > { %v713_v41 = vmul.f32 %v1456_v4, %v712_v47  ;;  %v705_v17 = vmul.f32 %v704_v11, %v696_v26  ;;  %v1022_v47 = vld [vmem:[%s1685_s22 + $0x20] sm:$0xff] }
 0x1dd   : > { %v726_v3 = vmul.f32 0.5, %v725_v62  ;;  %v1030_v62 = vsub.f32 %v1024_v21, %v2119_v33 }
 0x1de   : > { %v714_v51 = vmul.f32 0.5, %v713_v41  ;;  %v707_v58 = vsel %vm706_vm15, %v696_v26, %v705_v17  ;;  %v1025_v26 = vld [vmem:[%s1689_s18 + $0x8] sm:$0xff] }
 0x1df   : > { %v727_v53 = vsub.f32 1.5, %v726_v3  ;;  %v710_v29 = vsel %vm708_vm1, %v709_v59, %v707_v58  ;;  %v1031_v41 = vsub.f32 %v1025_v26, %v2123_v5  ;;  %v1042_v59 = vrot.slane %v1030_v62, 7 }
 0x1e0   : > { %v715_v54 = vsub.f32 1.5, %v714_v51  ;;  %v735_v24 = vsub.f32 1.0, %v710_v29 }
 0x1e1   : > { %v728_v56 = vmul.f32 %v1454_v30, %v727_v53  ;;  %v1026_v30 = vld [vmem:[%s1689_s18 + $0x10] sm:$0xff]  ;;  %v1043_v29 = vrot.slane %v1031_v41, 7 }
 0x1e2   : > { %v716_v57 = vmul.f32 %v1456_v4, %v715_v54  ;;  %v738_v50 = vmul.f32 17.0, %v735_v24  ;;  %v1032_v54 = vsub.f32 %v1026_v30, %v2137_v45  ;;  %v1046_v24 = vrot.slane %v1033_v38, 7 }
 0x1e3   : > { %v729_v61 = vmul.f32 %v728_v56, %v698_v43  ;;  %v1034_v56 = vsub.f32 %v1028_v49, %v1022_v47 }
 0x1e4   : > { %v717_v60 = vmul.f32 %v716_v57, %v697_v27  ;;  %v750_v18 = vsel %vm690_vm8, %v738_v50, %v747_v16  ;;  %v1045_v31 = vrot.slane %v1032_v54, 7 }
 0x1e5   : > { %v731_v63 = vsel %vm730_vm3, %v698_v43, %v729_v61  ;;  %v2132_v43 = vld [vmem:[%s1685_s22 + $0x28] sm:$0xff]  ;;  %s338_s22 = scalar_lea.vmem [#allocation6], %s1682_s10 }
 0x1e6   : > { %v719_v0 = vsel %vm718_vm4, %v697_v27, %v717_v60  ;;  %v734_v34 = vsel %vm732_vm5, %v733_v15, %v731_v63  ;;  %v1029_v27 = vld [vmem:[%s1689_s18 + $0x28] sm:$0xff] }
 0x1e7   : > { %v722_v48 = vsel %vm720_vm7, %v721_v13, %v719_v0  ;;  %v737_v25 = vsub.f32 1.0, %v734_v34  ;;  %v1035_v40 = vsub.f32 %v1029_v27, %v2132_v43  ;;  %v1048_v13 = vrot.slane %v1034_v56, 7 }
 0x1e8   : > { %v736_v10 = vsub.f32 1.0, %v722_v48  ;;  %v1044_v34 = vsel %vm409_vm2, %v1042_v59, %v1043_v29 }
 0x1e9   : > { %v740_v23 = vmul.f32 17.0, %v737_v25  ;;  %v1049_v63 = vrot.slane %v1035_v40, 7 }
 0x1ea   : > { %v739_v37 = vmul.f32 17.0, %v736_v10 }
 0x1eb   : > { %v752_v4 = vsel %vm692_vm9, %v740_v23, %v749_v39  ;;  %v1050_v16 = vsel %vm409_vm2, %v1048_v13, %v1049_v63 }
 0x1ec   : > { %v751_v2 = vsel %vm691_vm10, %v739_v37, %v748_v36 }
 0x1fb   : > { %v987_v1 = vpop.permute.xlu2 %986 }
 0x213   : > { %v993_v44 = vpop.permute.xlu2 %992 }
 0x223   : > { %v983_v7 = vpop.permute.xlu0 %982 }
 0x224   : > { %v985_v52 = vpop.permute.xlu1 %984 }
 0x225   : > { %v994_v8 = vsel %vm525_vm6, %v983_v7, %v985_v52  ;;  %v1047_v7 = vsel %vm409_vm2, %v1045_v31, %v1046_v24 }
 0x226   : > { %v1003_v12 = vmin.f32 %v750_v18, %v994_v8  ;;  %v1000_v22 = vadd.f32 %v994_v8, %v750_v18 }
 0x228   : > { %v1006_v32 = vmul.f32 0.3, %v1003_v12 }
 0x22a   : > { %v1009_v35 = vsub.f32 %v1000_v22, %v1006_v32 }
 0x22c   : > { %v991_v46 = vpop.permute.xlu1 %990  ;;  %v1012_v51 = vmax.f32 %v1009_v35, 0.0 }
 0x22d   : > { %v996_v55 = vsel %vm525_vm6, %v991_v46, %v993_v44 }
 0x22e   : > { %v989_v3 = vpop.permute.xlu0 %988  ;;  %v1005_v11 = vmin.f32 %v752_v4, %v996_v55  ;;  %v1002_v57 = vadd.f32 %v996_v55, %v752_v4  ;;  %v1015_v14 = vmul.f32 0.003921569, %v1012_v51 }
 0x22f   : > { %v995_v53 = vsel %vm525_vm6, %v987_v1, %v989_v3 }
 0x230   : > { %v1004_v17 = vmin.f32 %v751_v2, %v995_v53  ;;  %v1008_v58 = vmul.f32 0.3, %v1005_v11  ;;  %v1001_v61 = vadd.f32 %v995_v53, %v751_v2  ;;  %v1060_v9 = vmul.f32 %v1042_v59, %v1015_v14 }
 0x231   : > { %v1063_v1 = vmul.f32 %v1045_v31, %v1015_v14  ;;  %v1066_v25 = vmul.f32 %v1048_v13, %v1015_v14 }
 0x232   : > { %v1007_v60 = vmul.f32 0.3, %v1004_v17  ;;  %v1011_v0 = vsub.f32 %v1002_v57, %v1008_v58  ;;  %v1078_v22 = vrot.slane %v1060_v9, 1 }
 0x233   : > { %v1083_v21 = vrot.slane %v1063_v1, 1  ;;  %v1088_v42 = vrot.slane %v1066_v25, 1 }
 0x234   : > { %v1010_v15 = vsub.f32 %v1001_v61, %v1007_v60  ;;  %v1014_v50 = vmax.f32 %v1011_v0, 0.0 }
 0x236   : > { %v1013_v48 = vmax.f32 %v1010_v15, 0.0  ;;  %v1017_v6 = vmul.f32 0.003921569, %v1014_v50 }
 0x238   : > { %v1016_v52 = vmul.f32 0.003921569, %v1013_v48  ;;  %v1062_v10 = vmul.f32 %v1043_v29, %v1017_v6  ;;  %v1065_v18 = vmul.f32 %v1046_v24, %v1017_v6  ;;  %v1068_v8 = vmul.f32 %v1049_v63, %v1017_v6 }
 0x23a   : > { %v1061_v19 = vmul.f32 %v1044_v34, %v1016_v52  ;;  %v1064_v28 = vmul.f32 %v1047_v7, %v1016_v52  ;;  %v1067_v12 = vmul.f32 %v1050_v16, %v1016_v52  ;;  %v1081_v32 = vrot.slane %v1062_v10, 1 }
 0x23b   : > { %v1086_v23 = vrot.slane %v1065_v18, 1  ;;  %v1091_v37 = vrot.slane %v1068_v8, 1 }
 0x23c   : > { %v1079_v35 = vrot.slane %v1061_v19, 1  ;;  %v1084_v39 = vrot.slane %v1064_v28, 1  ;;  %v1089_v26 = vrot.slane %v1067_v12, 1 }
 0x23e   : > { %v1080_v36 = vsel %vm363_vm0, %v1078_v22, %v1079_v35  ;;  %v1082_v27 = vsel %vm363_vm0, %v1079_v35, %v1081_v32  ;;  %v1085_v44 = vsel %vm363_vm0, %v1083_v21, %v1084_v39  ;;  %v1087_v30 = vsel %vm363_vm0, %v1084_v39, %v1086_v23 }
 0x23f   : > { %v1090_v4 = vsel %vm363_vm0, %v1088_v42, %v1089_v26  ;;  %v1092_v46 = vsel %vm363_vm0, %v1089_v26, %v1091_v37  ;;  %v1099_v2 = vadd.f32 %v1080_v36, %v2119_v33  ;;  %v1100_v49 = vadd.f32 %v1082_v27, %v2123_v5 }
 0x240   : > { %v1101_v62 = vadd.f32 %v1085_v44, %v2137_v45  ;;  %v1102_v41 = vadd.f32 %v1087_v30, %v2126_v20  ;;  %v1103_v38 = vadd.f32 %v1090_v4, %v1022_v47  ;;  %v1104_v55 = vadd.f32 %v1092_v46, %v2132_v43 }
 0x241   : > { %1105 = vst [vmem:[%s338_s22] sm:$0xff] %v1099_v2 }
 0x242   : > { %1106 = vst [vmem:[%s338_s22 + $0x8] sm:$0xff] %v1100_v49 }
 0x243   : > { %1107 = vst [vmem:[%s338_s22 + $0x10] sm:$0xff] %v1101_v62 }
 0x244   : > { %1108 = vst [vmem:[%s338_s22 + $0x18] sm:$0xff] %v1102_v41 }
 0x245   : > { %1109 = vst [vmem:[%s338_s22 + $0x20] sm:$0xff] %v1103_v38 }
 0x246   : > { %1110 = vst [vmem:[%s338_s22 + $0x28] sm:$0xff] %v1104_v55 }
 0x247   : > { %s1299_s18 = sshll.u32 %s1511_s15, 1  ;;  %s1310_s25 = smul.u32 12, %s1515_s16 }
 0x248   : > { %s1136_s29 = sshll.u32 %s338_s22, 4  ;;  %s1540_s20 = smov 256   ;;  %s1137_s29 = int_to_ptr.vmem [resolvable:$true] %s1136_s29 }
 0x249   : > { %s1123_s10 = sadd.s32 %s1310_s25, %s1299_s18  ;;  %1320 = sst [smem:[#allocation10]] (%p1631_p9), %s1540_s20 }
 0x24a   : > { %s1300_s11 = sshll.u32 %s1123_s10, 3  ;;  %s1541_s6 = smov 512  }
 0x24b   : > { %s1125_s24 = scalar_lea.hbm %s2215_s3, %s1300_s11  ;;  %1321 = sst [smem:[#allocation10 + $0x1]] (%p1631_p9), %s1541_s6 }
 0x24c   : > { %s1138_s28 = sshll.u32 %s1125_s24, 4  ;;  %s1542_s15 = smov 2   ;;  %s1139_s28 = int_to_ptr.hbm [resolvable:$true] %s1138_s28 }
 0x24d   : > { %1322 = sst [smem:[#allocation10 + $0x2]] (%p1631_p9), %s1542_s15  ;;  %s1543_s16 = smov 128  }
 0x24e   : > { %1323 = sst [smem:[#allocation10 + $0x3]] (%p1631_p9), %s1543_s16  ;;  %s1544_s7 = smov 8  }
 0x24f   : > { %1324 = sst [smem:[#allocation10 + $0x4]] (%p1631_p9), %s1543_s16  ;;  %s1545_s26 = smov [#allocation9]  }
 0x250   : > { %1325 = sst [smem:[#allocation10 + $0x5]] (%p1631_p9), %s1544_s7  ;;  %s1546_s30 = smov 0  }
 0x251   : > { %1326 = dma.general (%p1631_p9), %s1137_s29, 768, %s1139_s28, %s1112_s1, %s1545_s26, [#allocation10], %s1546_s30, 0  }
 0x252 PF: > { %p1332_p5 = scmp.ge.s32.totalorder %s1527_s19, 2  ;;  %s1166_s8 = sand.u32 1, %s1499_s12  }
 0x253   : > { %s1167_s9 = scalar_lea.sflag [#allocation5], %s1166_s8 }
 0x254   : > { %p1329_p6 = pnand %p1332_p5, %p1638_p12 }
 0x256   : > { %p1330_p7 = pneg %p1329_p6 }
 0x258   : > { %1494 = dma.done.wait (%p1330_p7), %s1167_s9, 768  }
 0x259   : > { %1496 = vsyncadd (%p1330_p7), %s1167_s9, 4294966528  ;;  %s19_s19 = sadd.s32 1, %s1527_s19   ;;  %s2230_s15 = sld [smem:[#allocation14_spill]] }
 0x25a   : > { %p16_p8 = scmp.ge.s32.totalorder %s19_s19, 6   ;;  %s2231_s16 = sld [smem:[#allocation15_spill]] }
 0x25b   : > { %s2232_s17 = sld [smem:[#allocation16_spill]]  ;;  %s2234_s12 = smov %s1503_s13 }
 0x25c   : > { %s2233_s18 = sld [smem:[#allocation17_spill]]  ;;  %s2235_s13 = smov %s1507_s14 }
 0x25d   : > { %s2236_s14 = smov %s1643_s5  ;;  %18 = sbr.rel (!%p16_p8) target bundleno = 9 (0x9), region = 136 }
 0x262   :  { %1173 = vsyncpa [#allocation4], 1 }
 0x263   :  { %1175 = vsyncpa [#allocation4 + $0x1], 1 }
 0x264   :  { %1176 = vsyncpa [#allocation5], 1 }
 0x265   :  { %1178 = vsyncpa [#allocation5 + $0x1], 1 }

</bundles_post_ra>
